<compile_context>
chip_gen: v5e
topology: v5e:2x2
jax: 0.10.0
libtpu: 0.0.40
codegen_flags: <defaults>
</compile_context>

<pallas_src>
import functools
import math

import jax
import jax.numpy as jnp
from jax.experimental import pallas as pl
from jax.experimental.pallas import tpu as pltpu

# ---- module hyper-parameters (ArcMarginLoss.__init__ / update) ----
SCALE = 32.0
MARGIN = 0.2
EASY_MARGIN = False
COS_M = math.cos(MARGIN)
SIN_M = math.sin(MARGIN)
TH = math.cos(math.pi - MARGIN)
MMM = 1.0 + math.cos(math.pi - MARGIN)

NEG_INF = -1e30  # finite "minus infinity" (exp underflows to 0, never NaN)


def _apply_margin(t):
    """Additive angular margin on a (TB, 1) target-cosine column (one sqrt per row)."""
    sine = jnp.sqrt(jnp.maximum(1.0 - t * t, 0.0))
    phi = t * COS_M - sine * SIN_M
    if EASY_MARGIN:
        return jnp.where(t > 0.0, phi, t)
    return jnp.where(t > TH, phi, t - MMM)


def arc_margin_loss_kernel(cos_ref, tcos_ref, loss_ref, m_ref, l_ref, *, c_total, tc):
    j = pl.program_id(1)
    nj = pl.num_programs(1)

    # ---- init running statistics at the first class tile of each batch tile ----
    @pl.when(j == 0)
    def _():
        m_ref[...] = jnp.full_like(m_ref, NEG_INF)
        l_ref[...] = jnp.zeros_like(l_ref)

    # streamed tile body: pure scale / max / exp / sum (no iota, no one-hot selects)
    logits = SCALE * cos_ref[...].astype(jnp.float32)          # (TB, TC)

    def online_update(lg):
        m_prev = m_ref[...]
        m_new = jnp.maximum(m_prev, jnp.max(lg, axis=-1, keepdims=True))
        l_ref[...] = (jnp.exp(m_prev - m_new) * l_ref[...]
                      + jnp.sum(jnp.exp(lg - m_new), axis=-1, keepdims=True))
        m_ref[...] = m_new

    if c_total % tc != 0:
        # ragged class dimension: only the LAST tile pays for the padding mask
        @pl.when(j == nj - 1)
        def _():
            lane = jax.lax.broadcasted_iota(jnp.int32, logits.shape, 1)
            online_update(jnp.where(lane < (c_total - j * tc), logits, NEG_INF))

        @pl.when(j != nj - 1)
        def _():
            online_update(logits)
    else:
        online_update(logits)

    # ---- finalize: swap the plain target term for the margin term, emit per-row CE ----
    @pl.when(j == nj - 1)
    def _():
        tcos = tcos_ref[...]                       # (TB, 1) f32 target cosine
        s_cos_t = SCALE * tcos
        s_phi_t = SCALE * _apply_margin(tcos)      # phi_t <= cos_t, so exponents <= 0
        m = m_ref[...]
        l = l_ref[...] + jnp.exp(s_phi_t - m) - jnp.exp(s_cos_t - m)
        loss_ref[...] = (m + jnp.log(l)) - s_phi_t


def _sublane(dtype):
    """Minimum second-minor tile multiple for this dtype (8 f32, 16 bf16, 32 int8/fp8)."""
    return {4: 8, 2: 16, 1: 32}.get(jnp.dtype(dtype).itemsize, 8)


def _pick_batch_tile(b, want, *, sub=8, min_tiles=2):
    """Largest sublane-aligned divisor of b that is <= want and (best effort) yields
    at least `min_tiles` batch tiles so the parallel axis spans both v7x TensorCores."""
    cap = b
    if b >= min_tiles * sub:
        cap = (b // min_tiles) // sub * sub
    want = min(want, cap, b)
    t = (want // sub) * sub
    while t >= sub:
        if b % t == 0:
            return t
        t -= sub
    return b  # full extent is always legal


def _pick_class_tile(c, want):
    """Prefer a 128-aligned divisor of c (no ragged tail anywhere); else lane-aligned."""
    want = min(want, c)
    if want >= c:
        return c
    t = (want // 128) * 128
    d = t
    while d >= 128:
        if c % d == 0:
            return d
        d -= 128
    return max(t, 128)


def _vmem_defaults():
    """(default block_c, scoped VMEM limit) chosen from the chip's VMEM capacity."""
    try:
        cap = pltpu.get_tpu_info().vmem_capacity_bytes
    except Exception:
        cap = 64 << 20
    if cap >= (100 << 20):       # v5e / v6e: 128 MiB VMEM -> 16 MiB f32 blocks
        return 16384, 64 << 20
    return 8192, 32 << 20        # v7x: 64 MiB/TC -> keep 8 MiB blocks, 32 MiB limit


def arc_margin_loss(cosine, label, *, block_b=None, block_c=None, vmem_limit_bytes=None):
    """cosine: (B, C) f32/bf16 (bf16 recommended when HBM-bound), label: (B,) int.
    Returns the scalar mean cross-entropy loss (f32)."""
    B, C = cosine.shape
    auto_c, auto_vmem = _vmem_defaults()
    block_b = 256 if block_b is None else block_b
    block_c = auto_c if block_c is None else block_c
    vmem_limit_bytes = auto_vmem if vmem_limit_bytes is None else vmem_limit_bytes

    label2d = label.astype(jnp.int32).reshape(B, 1)
    # Target cosine hoisted to the wrapper: a tiny (B,1) gather, resident per batch tile.
    # Note: out-of-range labels are clamped by the gather (PyTorch would raise instead).
    tcos = jnp.take_along_axis(cosine, label2d, axis=1).astype(jnp.float32)   # (B, 1)

    tb = _pick_batch_tile(B, block_b, sub=_sublane(cosine.dtype))
    tc = _pick_class_tile(C, block_c)
    nb = B // tb
    nc = pl.cdiv(C, tc)

    kernel = functools.partial(arc_margin_loss_kernel, c_total=C, tc=tc)
    itemsize = jnp.dtype(cosine.dtype).itemsize

    per_row = pl.pallas_call(
        kernel,
        out_shape=jax.ShapeDtypeStruct((B, 1), jnp.float32),
        grid_spec=pltpu.PrefetchScalarGridSpec(
            num_scalar_prefetch=0,
            grid=(nb, nc),
            in_specs=[
                pl.BlockSpec((tb, tc), lambda i, j: (i, j)),   # cosine tiles (streamed)
                pl.BlockSpec((tb, 1), lambda i, j: (i, 0)),    # target cosine (resident)
            ],
            out_specs=pl.BlockSpec((tb, 1), lambda i, j: (i, 0)),   # per-row loss
            scratch_shapes=[
                pltpu.VMEM((tb, 1), jnp.float32),   # running max m
                pltpu.VMEM((tb, 1), jnp.float32),   # running sum l
            ],
        ),
        compiler_params=pltpu.CompilerParams(
            dimension_semantics=("parallel", "arbitrary"),
            vmem_limit_bytes=vmem_limit_bytes,
        ),
        cost_estimate=pl.CostEstimate(
            flops=4 * B * C,
            transcendentals=B * C,
            bytes_accessed=B * C * itemsize + 8 * B,
        ),
    )(cosine, tcos)

    # tiny final reduction (mean over B rows) outside the kernel
    return jnp.mean(per_row[:, 0])


def _reference(cos_f32, label, C):
    """Pure-JAX mirror of the PyTorch forward."""
    sine = jnp.sqrt(jnp.maximum(1.0 - cos_f32 ** 2, 0.0))
    phi = cos_f32 * COS_M - sine * SIN_M
    phi = jnp.where(cos_f32 > TH, phi, cos_f32 - MMM)
    one_hot = jax.nn.one_hot(label, C, dtype=jnp.float32)
    logits = (one_hot * phi + (1.0 - one_hot) * cos_f32) * SCALE
    return jnp.mean(jax.nn.logsumexp(logits, axis=-1) -
                    jnp.take_along_axis(logits, label[:, None], axis=1)[:, 0])


if __name__ == "__main__":
    key = jax.random.PRNGKey(0)
    k1, k2 = jax.random.split(key)

    # small demo shapes exercising the tiled path:
    #   B=16 -> two batch tiles (block_b=8), C=1000 -> 4 class tiles with a ragged tail.
    B, C = 16, 1000
    cosine = jax.random.uniform(k1, (B, C), jnp.float32, minval=-0.99, maxval=0.99)
    label = jax.random.randint(k2, (B,), 0, C, dtype=jnp.int32)

    # f32 path
    loss = arc_margin_loss(cosine, label, block_b=8, block_c=256)
    jax.block_until_ready(loss)
    ref = _reference(cosine, label, C)
    assert jnp.allclose(loss, ref, atol=1e-4, rtol=1e-4), (loss, ref)

    # bf16 input path (halved HBM traffic; kernel upcasts per tile in VMEM)
    cos_bf = cosine.astype(jnp.bfloat16)
    loss_bf = arc_margin_loss(cos_bf, label, block_b=8, block_c=256)
    jax.block_until_ready(loss_bf)
    ref_bf = _reference(cos_bf.astype(jnp.float32), label, C)
    assert jnp.allclose(loss_bf, ref_bf, atol=5e-3, rtol=5e-3), (loss_bf, ref_bf)

    print("KERNEL_OK")
</pallas_src>

<mosaic_0001>
module attributes {stable_mosaic.version = 11 : i64} {
  func.func @arc_margin_loss_kernel(%arg0: i32, %arg1: i32, %arg2: memref<8x256xf32, #tpu.memory_space<vmem>>, %arg3: memref<8x1xf32, #tpu.memory_space<vmem>>, %arg4: memref<8x1xf32, #tpu.memory_space<vmem>>, %arg5: memref<8x1xf32, #tpu.memory_space<vmem>>, %arg6: memref<8x1xf32, #tpu.memory_space<vmem>>) attributes {dimension_semantics = [#tpu.dimension_semantics<parallel>, #tpu.dimension_semantics<arbitrary>], iteration_bounds = array<i64: 2, 4>, scalar_prefetch = 0 : i64, scratch_operands = 2 : i64, tpu.core_type = #tpu.core_type<tc>, window_params = [{transform_indices = @transform_0, window_bounds = array<i64: 8, 256>}, {transform_indices = @transform_1, window_bounds = array<i64: 8, 1>}, {transform_indices = @transform_2, window_bounds = array<i64: 8, 1>}]} {
    %c0_i32 = arith.constant 0 : i32
    %0 = arith.cmpi eq, %arg1, %c0_i32 : i32
    %1 = arith.extui %0 : i1 to i32
    %c0_i32_0 = arith.constant 0 : i32
    %2 = arith.cmpi ne, %1, %c0_i32_0 : i32
    scf.if %2 {
      %cst_7 = arith.constant -1.000000e+30 : f32
      %15 = vector.broadcast %cst_7 : f32 to vector<8x1xf32>
      %c0_8 = arith.constant 0 : index
      %c0_9 = arith.constant 0 : index
      %16 = vector.load %arg5[%c0_8, %c0_9] : memref<8x1xf32, #tpu.memory_space<vmem>>, vector<8x1xf32>
      tpu.vector_store %arg5[%c0_8, %c0_9], %15 {strides = array<i32>} : memref<8x1xf32, #tpu.memory_space<vmem>>, vector<8x1xf32>,
      %cst_10 = arith.constant 0.000000e+00 : f32
      %17 = vector.broadcast %cst_10 : f32 to vector<8x1xf32>
      %c0_11 = arith.constant 0 : index
      %c0_12 = arith.constant 0 : index
      %18 = vector.load %arg6[%c0_11, %c0_12] : memref<8x1xf32, #tpu.memory_space<vmem>>, vector<8x1xf32>
      tpu.vector_store %arg6[%c0_11, %c0_12], %17 {strides = array<i32>} : memref<8x1xf32, #tpu.memory_space<vmem>>, vector<8x1xf32>,
    } else {
    }
    %c0 = arith.constant 0 : index
    %c0_1 = arith.constant 0 : index
    %3 = vector.load %arg2[%c0, %c0_1] : memref<8x256xf32, #tpu.memory_space<vmem>>, vector<8x256xf32>
    %cst = arith.constant 3.200000e+01 : f32
    %4 = vector.broadcast %cst : f32 to vector<8x256xf32>
    %5 = arith.mulf %4, %3 : vector<8x256xf32>
    %c3_i32 = arith.constant 3 : i32
    %6 = arith.cmpi eq, %arg1, %c3_i32 : i32
    %7 = arith.extui %6 : i1 to i32
    %c0_i32_2 = arith.constant 0 : i32
    %8 = arith.cmpi ne, %7, %c0_i32_2 : i32
    scf.if %8 {
      %15 = tpu.iota {dimensions = array<i32: 1>} : vector<8x256xi32>
      %c256_i32 = arith.constant 256 : i32
      %16 = arith.muli %arg1, %c256_i32 : i32
      %c1000_i32 = arith.constant 1000 : i32
      %17 = arith.subi %c1000_i32, %16 : i32
      %18 = vector.broadcast %17 : i32 to vector<8x256xi32>
      %19 = arith.cmpi slt, %15, %18 : vector<8x256xi32>
      %cst_7 = arith.constant -1.000000e+30 : f32
      %20 = vector.broadcast %cst_7 : f32 to vector<8x256xf32>
      %21 = arith.select %19, %5, %20 : vector<8x256xi1>, vector<8x256xf32>
      %c0_8 = arith.constant 0 : index
      %c0_9 = arith.constant 0 : index
      %22 = vector.load %arg5[%c0_8, %c0_9] : memref<8x1xf32, #tpu.memory_space<vmem>>, vector<8x1xf32>
      %cst_10 = arith.constant dense<0xFF800000> : vector<8xf32>
      %23 = vector.multi_reduction <maximumf>, %21, %cst_10 [1] : vector<8x256xf32> to vector<8xf32>
      %24 = vector.shape_cast %23 : vector<8xf32> to vector<8x1xf32>
      %25 = arith.maximumf %22, %24 : vector<8x1xf32>
      %26 = arith.subf %22, %25 : vector<8x1xf32>
      %27 = math.exp %26 : vector<8x1xf32>
      %c0_11 = arith.constant 0 : index
      %c0_12 = arith.constant 0 : index
      %28 = vector.load %arg6[%c0_11, %c0_12] : memref<8x1xf32, #tpu.memory_space<vmem>>, vector<8x1xf32>
      %29 = arith.mulf %27, %28 : vector<8x1xf32>
      %30 = vector.broadcast %25 : vector<8x1xf32> to vector<8x256xf32>
      %31 = arith.subf %21, %30 : vector<8x256xf32>
      %32 = math.exp %31 : vector<8x256xf32>
      %cst_13 = arith.constant dense<0.000000e+00> : vector<8xf32>
      %33 = vector.multi_reduction <add>, %32, %cst_13 [1] : vector<8x256xf32> to vector<8xf32>
      %34 = vector.shape_cast %33 : vector<8xf32> to vector<8x1xf32>
      %35 = arith.addf %29, %34 : vector<8x1xf32>
      %c0_14 = arith.constant 0 : index
      %c0_15 = arith.constant 0 : index
      %36 = vector.load %arg6[%c0_14, %c0_15] : memref<8x1xf32, #tpu.memory_space<vmem>>, vector<8x1xf32>
      tpu.vector_store %arg6[%c0_14, %c0_15], %35 {strides = array<i32>} : memref<8x1xf32, #tpu.memory_space<vmem>>, vector<8x1xf32>,
      %c0_16 = arith.constant 0 : index
      %c0_17 = arith.constant 0 : index
      %37 = vector.load %arg5[%c0_16, %c0_17] : memref<8x1xf32, #tpu.memory_space<vmem>>, vector<8x1xf32>
      tpu.vector_store %arg5[%c0_16, %c0_17], %25 {strides = array<i32>} : memref<8x1xf32, #tpu.memory_space<vmem>>, vector<8x1xf32>,
    } else {
    }
    %c3_i32_3 = arith.constant 3 : i32
    %9 = arith.cmpi ne, %arg1, %c3_i32_3 : i32
    %10 = arith.extui %9 : i1 to i32
    %c0_i32_4 = arith.constant 0 : i32
    %11 = arith.cmpi ne, %10, %c0_i32_4 : i32
    scf.if %11 {
      %c0_7 = arith.constant 0 : index
      %c0_8 = arith.constant 0 : index
      %15 = vector.load %arg5[%c0_7, %c0_8] : memref<8x1xf32, #tpu.memory_space<vmem>>, vector<8x1xf32>
      %cst_9 = arith.constant dense<0xFF800000> : vector<8xf32>
      %16 = vector.multi_reduction <maximumf>, %5, %cst_9 [1] : vector<8x256xf32> to vector<8xf32>
      %17 = vector.shape_cast %16 : vector<8xf32> to vector<8x1xf32>
      %18 = arith.maximumf %15, %17 : vector<8x1xf32>
      %19 = arith.subf %15, %18 : vector<8x1xf32>
      %20 = math.exp %19 : vector<8x1xf32>
      %c0_10 = arith.constant 0 : index
      %c0_11 = arith.constant 0 : index
      %21 = vector.load %arg6[%c0_10, %c0_11] : memref<8x1xf32, #tpu.memory_space<vmem>>, vector<8x1xf32>
      %22 = arith.mulf %20, %21 : vector<8x1xf32>
      %23 = vector.broadcast %18 : vector<8x1xf32> to vector<8x256xf32>
      %24 = arith.subf %5, %23 : vector<8x256xf32>
      %25 = math.exp %24 : vector<8x256xf32>
      %cst_12 = arith.constant dense<0.000000e+00> : vector<8xf32>
      %26 = vector.multi_reduction <add>, %25, %cst_12 [1] : vector<8x256xf32> to vector<8xf32>
      %27 = vector.shape_cast %26 : vector<8xf32> to vector<8x1xf32>
      %28 = arith.addf %22, %27 : vector<8x1xf32>
      %c0_13 = arith.constant 0 : index
      %c0_14 = arith.constant 0 : index
      %29 = vector.load %arg6[%c0_13, %c0_14] : memref<8x1xf32, #tpu.memory_space<vmem>>, vector<8x1xf32>
      tpu.vector_store %arg6[%c0_13, %c0_14], %28 {strides = array<i32>} : memref<8x1xf32, #tpu.memory_space<vmem>>, vector<8x1xf32>,
      %c0_15 = arith.constant 0 : index
      %c0_16 = arith.constant 0 : index
      %30 = vector.load %arg5[%c0_15, %c0_16] : memref<8x1xf32, #tpu.memory_space<vmem>>, vector<8x1xf32>
      tpu.vector_store %arg5[%c0_15, %c0_16], %18 {strides = array<i32>} : memref<8x1xf32, #tpu.memory_space<vmem>>, vector<8x1xf32>,
    } else {
    }
    %c3_i32_5 = arith.constant 3 : i32
    %12 = arith.cmpi eq, %arg1, %c3_i32_5 : i32
    %13 = arith.extui %12 : i1 to i32
    %c0_i32_6 = arith.constant 0 : i32
    %14 = arith.cmpi ne, %13, %c0_i32_6 : i32
    scf.if %14 {
      %c0_7 = arith.constant 0 : index
      %c0_8 = arith.constant 0 : index
      %15 = vector.load %arg3[%c0_7, %c0_8] : memref<8x1xf32, #tpu.memory_space<vmem>>, vector<8x1xf32>
      %cst_9 = arith.constant 3.200000e+01 : f32
      %16 = vector.broadcast %cst_9 : f32 to vector<8x1xf32>
      %17 = arith.mulf %16, %15 : vector<8x1xf32>
      %18 = arith.mulf %15, %15 : vector<8x1xf32>
      %cst_10 = arith.constant 1.000000e+00 : f32
      %19 = vector.broadcast %cst_10 : f32 to vector<8x1xf32>
      %20 = arith.subf %19, %18 : vector<8x1xf32>
      %cst_11 = arith.constant 0.000000e+00 : f32
      %21 = vector.broadcast %cst_11 : f32 to vector<8x1xf32>
      %22 = arith.maximumf %20, %21 : vector<8x1xf32>
      %23 = math.sqrt %22 : vector<8x1xf32>
      %cst_12 = arith.constant 0.980066597 : f32
      %24 = vector.broadcast %cst_12 : f32 to vector<8x1xf32>
      %25 = arith.mulf %15, %24 : vector<8x1xf32>
      %cst_13 = arith.constant 0.198669329 : f32
      %26 = vector.broadcast %cst_13 : f32 to vector<8x1xf32>
      %27 = arith.mulf %23, %26 : vector<8x1xf32>
      %28 = arith.subf %25, %27 : vector<8x1xf32>
      %cst_14 = arith.constant -0.980066597 : f32
      %29 = vector.broadcast %cst_14 : f32 to vector<8x1xf32>
      %30 = arith.cmpf ogt, %15, %29 : vector<8x1xf32>
      %cst_15 = arith.constant 0.019933423 : f32
      %31 = vector.broadcast %cst_15 : f32 to vector<8x1xf32>
      %32 = arith.subf %15, %31 : vector<8x1xf32>
      %33 = arith.select %30, %28, %32 : vector<8x1xi1>, vector<8x1xf32>
      %cst_16 = arith.constant 3.200000e+01 : f32
      %34 = vector.broadcast %cst_16 : f32 to vector<8x1xf32>
      %35 = arith.mulf %34, %33 : vector<8x1xf32>
      %c0_17 = arith.constant 0 : index
      %c0_18 = arith.constant 0 : index
      %36 = vector.load %arg5[%c0_17, %c0_18] : memref<8x1xf32, #tpu.memory_space<vmem>>, vector<8x1xf32>
      %c0_19 = arith.constant 0 : index
      %c0_20 = arith.constant 0 : index
      %37 = vector.load %arg6[%c0_19, %c0_20] : memref<8x1xf32, #tpu.memory_space<vmem>>, vector<8x1xf32>
      %38 = arith.subf %35, %36 : vector<8x1xf32>
      %39 = math.exp %38 : vector<8x1xf32>
      %40 = arith.addf %37, %39 : vector<8x1xf32>
      %41 = arith.subf %17, %36 : vector<8x1xf32>
      %42 = math.exp %41 : vector<8x1xf32>
      %43 = arith.subf %40, %42 : vector<8x1xf32>
      %44 = math.log %43 : vector<8x1xf32>
      %45 = arith.addf %36, %44 : vector<8x1xf32>
      %46 = arith.subf %45, %35 : vector<8x1xf32>
      %c0_21 = arith.constant 0 : index
      %c0_22 = arith.constant 0 : index
      %47 = vector.load %arg4[%c0_21, %c0_22] : memref<8x1xf32, #tpu.memory_space<vmem>>, vector<8x1xf32>
      tpu.vector_store %arg4[%c0_21, %c0_22], %46 {strides = array<i32>} : memref<8x1xf32, #tpu.memory_space<vmem>>, vector<8x1xf32>,
    } else {
    }
    return
  }
  func.func @transform_0(%arg0: i32, %arg1: i32) -> (i32, i32) {
    %c0_i32 = arith.constant 0 : i32
    return %arg0, %arg1 : i32, i32
  }
  func.func @transform_1(%arg0: i32, %arg1: i32) -> (i32, i32) {
    %c0_i32 = arith.constant 0 : i32
    %c0_i32_0 = arith.constant 0 : i32
    return %arg0, %c0_i32 : i32, i32
  }
  func.func @transform_2(%arg0: i32, %arg1: i32) -> (i32, i32) {
    %c0_i32 = arith.constant 0 : i32
    %c0_i32_0 = arith.constant 0 : i32
    return %arg0, %c0_i32 : i32, i32
  }
}

</mosaic_0001>

<bundles_post_ra>
// kernel: tpu_custom_call.1
= control target key start
LH: loop header
LB: loop body
LE: loop exit
PB: predicated region body
PF: predicated region fallthrough
CT: control target
= control target key end

     0   :  { %7 = vsyncpa [#allocation5], 0  ;;  %s783_s0 = inlined_call_operand.hbm [shape: f32[16,1000], index: 0, kind: input, shape index: {}]   ;;  %s784_s1 = inlined_call_operand.vmem [shape: f32[16,1], index: 1, kind: input, shape index: {}]   ;;  %s785_s2 = inlined_call_operand.vmem [shape: f32[16,1], index: 2, kind: output, shape index: {}]  }
   0x1   :  { %9 = vsyncpa [#allocation5 + $0x1], 0  ;;  %s649_s9 = smov 0   ;;  %s651_s10 = smov 0  }
   0x2   :  { %s653_s11 = smov 0   ;;  %s655_s12 = smov 0  }
   0x3   :  { %s657_s13 = smov 0   ;;  %s659_s14 = smov 0  }
   0x4   :  { %s661_s15 = smov 0   ;;  %s663_s16 = smov 0  }
   0x5 LB: > { %s415_s17 = sadd.s32 4294967295, %s628_s16   ;;  %s24_s18 = sadd.s32 1, %s620_s14  ;;  %s628_s16 = sphi %s663_s16, %s15_s16   ;;  %s624_s15 = sphi %s661_s15, %s794_s15   ;;  %s620_s14 = sphi %s659_s14, %s793_s14   ;;  %s616_s13 = sphi %s657_s13, %s792_s13   ;;  %s612_s12 = sphi %s655_s12, %s791_s12   ;;  %s608_s11 = sphi %s653_s11, %s790_s11   ;;  %s604_s10 = sphi %s651_s10, %s789_s10   ;;  %s600_s9 = sphi %s649_s9, %s788_s9  }
   0x6   : > { %p25_p0 = scmp.ge.s32.totalorder %s24_s18, 4  ;;  %s27_s19 = sadd.s32 1, %s624_s15 }
   0x7   : > { %s36_s20 = sadd.s32 1, %s608_s11  ;;  %p43_p1 = scmp.ne.s32.totalorder %s608_s11, %s604_s10 }
   0x8   : > { %s796_s18 = smov (%p25_p0, %s24_s18), 0  ;;  %s798_s19 = smov (!%p25_p0, %s27_s19), %s624_s15 }
   0x9   : > { %s32_s21 = ssub.s32 %s620_s14, %s796_s18  ;;  %p44_p2 = scmp.eq.s32.totalorder %s628_s16, 0 }
   0xa   : > { %p29_p3 = scmp.ge.s32.totalorder %s798_s19, 2  ;;  %p49_p4 = scmp.ne.s32.totalorder %s604_s10, %s600_s9 }
   0xb   : > { %p700_p5 = por %p44_p2, %p43_p1  ;;  %p50_p6 = scmp.eq.s32.totalorder %s415_s17, 0 }
   0xc   : > { %s800_s19 = smov (%p29_p3, %s798_s19), 0  ;;  %p441_p8 = scmp.lt.s32.totalorder %s628_s16, 8 }
   0xd   : > { %p706_p7 = por %p50_p6, %p49_p4  ;;  %s31_s24 = ssub.s32 %s624_s15, %s800_s19 }
   0xe   : > { %s33_s25 = sor.u32 %s32_s21, %s31_s24  ;;  %s125_s26 = sand.u32 1, %s608_s11  }
   0xf   : > { %p34_p9 = scmp.eq.s32.totalorder %s33_s25, 0  ;;  %s419_s27 = sshll.u32 %s125_s26, 4 }
  0x10   : > { %s420_s28 = sshll.u32 %s620_s14, 1  ;;  %s421_s30 = sshll.u32 %s624_s15, 3 }
  0x11   : > { %s716_s29 = scalar_select %p34_p9, %s608_s11, %s36_s20  }
  0x12   : > { %s134_s3 = sadd.s32 %s421_s30, %s420_s28  ;;  %s129_s4 = scalar_lea.vmem [#allocation4], %s419_s27 }
  0x13   : > { %s140_s5 = sshll.u32 %s129_s4, 4  ;;  %s422_s6 = sshll.u32 %s134_s3, 3  ;;  %s141_s5 = int_to_ptr.vmem [resolvable:$true] %s140_s5 }
  0x14   : > { %s136_s9 = scalar_lea.hbm %s783_s0, %s422_s6  ;;  %p438_p10 = pnand %p441_p8, %p700_p5 }
  0x15   : > { %s138_s17 = sshll.u32 %s136_s9, 4  ;;  %p423_p11 = scmp.ge.s32.totalorder %s628_s16, 1  ;;  %s139_s17 = int_to_ptr.hbm [resolvable:$true] %s138_s17 }
  0x16   : > { %s126_s21 = scalar_lea.sflag [#allocation5], %s125_s26  ;;  %p152_p12 = scmp.lt.s32.totalorder %s628_s16, 9 }
  0x17   : > { %440 = dma.hbm_to_vmem [thread:$0]  (!%p438_p10), %s139_s17, 256, %s141_s5, %s126_s21  }
  0x18   : > { %p153_p13 = pnand %p423_p11, %p152_p12 }
  0x19   : > { %s158_s20 = sand.u32 (!%p153_p13), 1, %s604_s10  }
  0x1a   : > { %156 = sbr.rel (%p153_p13) target bundleno = 869 (0x365), region = 28  ;;  %s424_s24 = sshll.u32 (!%p153_p13), %s158_s20, 4 }
  0x1b   : > { %s159_s25 = scalar_lea.sflag (!%p153_p13), [#allocation5], %s158_s20  ;;  %s162_s27 = scalar_lea.vmem (!%p153_p13), [#allocation4], %s424_s24 }
  0x1f   : > { %595 = dma.done.wait (%p706_p7), %s159_s25, 256  }
  0x20   : > { %597 = vsyncadd (%p706_p7), %s159_s25, 4294967040  ;;  %p188_p0 = scmp.lt.s32.totalorder %s616_s13, 1  ;;  %p427_p1 = scmp.ne.s32.totalorder %s612_s12, 0 }
  0x22   : > { %s802_s13 = smov (!%p188_p0, %s616_s13), 1  ;;  %199 = sbr.rel (%p427_p1) target bundleno = 42 (0x2a), region = 36 }
  0x23   : > { %s425_s22 = sshll.u32 %s802_s13, 3 }
  0x24   : > { %s738_s30 = scalar_lea.vmem %s784_s1, %s425_s22  ;;  %s743_s5 = scalar_lea.vmem %s785_s2, %s425_s22 }
  0x27   : > { %vm200_vm0 = vcmask 7168   ;;  %v630_v0 = vmov -1e+30   ;;  %v631_v1 = vmov 0.0  }
  0x28   : > { %201 = vst.msk [vmem:[#allocation2] sm:$0xff] %vm200_vm0, %v630_v0 }
  0x29   : > { %202 = vst.msk [vmem:[#allocation3] sm:$0xff] %vm200_vm0, %v631_v1 }
  0x2a PF: > { %v203_v2 = vld [vmem:[%s162_s27] sm:$0xff]  ;;  %v204_v3 = vld [vmem:[%s162_s27 + $0x8] sm:$0xff]  ;;  %p428_p2 = scmp.ne.s32.totalorder %s612_s12, 3 }
  0x2b   : > { %v205_v4 = vmul.f32 32.0, %v203_v2  ;;  %v206_v5 = vmul.f32 32.0, %v204_v3  ;;  %s429_s13 = sshll.u32 (!%p428_p2), %s612_s12, 8 }
  0x2c   : > { %210 = sbr.rel (%p428_p2) target bundleno = 425 (0x1a9), region = 40  ;;  %s215_s23 = ssub.s32 (!%p428_p2), 1000, %s429_s13 }
  0x31   : > { %v211_v6 = vlaneseq  ;;  %v216_v8 = vstv %s215_s23  ;;  %v632_v13 = vmov 0   ;;  %v221_v14 = vld [vmem:[#allocation2] sm:$0xff]  ;;  %vm246_vm3 = vcmask 7168   ;;  %v229_v28 = vld [vmem:[#allocation3] sm:$0xff] }
  0x32   : > { %510 = vset.pattern.permute.xlu0 %v632_v13 }
  0x33   : > { %v212_v7 = vand.u32 127, %v211_v6 }
  0x35   : > { %v213_v9 = vadd.s32 128, %v212_v7  ;;  %vm217_vm1 = vcmp.lt.s32.totalorder %v212_v7, %v216_v8 }
  0x36   : > { %v219_v10 = vsel %vm217_vm1, %v205_v4, -1e+30 }
  0x37   : > { %vm218_vm2 = vcmp.lt.s32.totalorder %v213_v9, %v216_v8 }
  0x38   : > { %v220_v11 = vsel %vm218_vm2, %v206_v5, -1e+30 }
  0x39   : > { %v222_v12 = vmax.f32 %v219_v10, %v220_v11 }
  0x3b   : > { %223 = vmax.xlane.f32.xlu0 %v222_v12 }
  0xae   : > { %v224_v15 = vpop.xlane.xlu0 %223 }
  0xaf   : > { %v225_v16 = vmax.f32 %v221_v14, %v224_v15 }
  0xb1   : > { %v226_v17 = vsub.f32 %v221_v14, %v225_v16  ;;  %248 = vst.msk [vmem:[#allocation2] sm:$0xff] %vm246_vm3, %v225_v16  ;;  %233 = vperm.xlu0 %510, %v225_v16  }
  0xb3   : > { %v227_v26 = vmul.f32 1.442695, %v226_v17 }
 0x123   : > { %v234_v18 = vpop.permute.xlu0 %233 }
 0x124   : > { %v236_v19 = vsub.f32 %v219_v10, %v234_v18  ;;  %v237_v20 = vsub.f32 %v220_v11, %v234_v18 }
 0x126   : > { %v238_v21 = vmul.f32 1.442695, %v236_v19  ;;  %v240_v22 = vmul.f32 1.442695, %v237_v20 }
 0x128   : > { %511 = vpow2.f32 %v238_v21 }
 0x129   : > { %513 = vpow2.f32 %v240_v22 }
 0x12a   : > { %515 = vpow2.f32 %v227_v26 }
 0x12e   : > { %v512_v23 = vpop.eup %511 }
 0x12f   : > { %v514_v24 = vpop.eup %513 }
 0x130   : > { %v242_v25 = vadd.f32 %v514_v24, %v512_v23  ;;  %v516_v27 = vpop.eup %515 }
 0x131   : > { %v230_v29 = vmul.f32 %v516_v27, %v229_v28 }
 0x132   : > { %243 = vadd.xlane.f32.xlu1 %v242_v25 }
 0x1a5   : > { %v244_v30 = vpop.xlane.xlu1 %243 }
 0x1a6   : > { %v245_v31 = vadd.f32 %v244_v30, %v230_v29 }
 0x1a8   : > { %247 = vst.msk [vmem:[#allocation3] sm:$0xff] %vm246_vm3, %v245_v31 }
 0x1a9 PF: > { %p430_p3 = scmp.eq.s32.totalorder %s612_s12, 3 }
 0x1ab   : > { %252 = sbr.rel (%p430_p3) target bundleno = 800 (0x320), region = 44 }
 0x1b0   : > { %v254_v32 = vmax.f32 %v205_v4, %v206_v5  ;;  %v633_v33 = vmov 0   ;;  %v253_v34 = vld [vmem:[#allocation2] sm:$0xff]  ;;  %vm278_vm4 = vcmask 7168   ;;  %v261_v48 = vld [vmem:[#allocation3] sm:$0xff] }
 0x1b1   : > { %517 = vset.pattern.permute.xlu0 %v633_v33 }
 0x1b2   : > { %255 = vmax.xlane.f32.xlu0 %v254_v32 }
 0x225   : > { %v256_v35 = vpop.xlane.xlu0 %255 }
 0x226   : > { %v257_v36 = vmax.f32 %v253_v34, %v256_v35 }
 0x228   : > { %v258_v37 = vsub.f32 %v253_v34, %v257_v36  ;;  %280 = vst.msk [vmem:[#allocation2] sm:$0xff] %vm278_vm4, %v257_v36  ;;  %265 = vperm.xlu0 %517, %v257_v36  }
 0x22a   : > { %v259_v46 = vmul.f32 1.442695, %v258_v37 }
 0x29a   : > { %v266_v38 = vpop.permute.xlu0 %265 }
 0x29b   : > { %v268_v39 = vsub.f32 %v205_v4, %v266_v38  ;;  %v269_v40 = vsub.f32 %v206_v5, %v266_v38 }
 0x29d   : > { %v270_v41 = vmul.f32 1.442695, %v268_v39  ;;  %v272_v42 = vmul.f32 1.442695, %v269_v40 }
 0x29f   : > { %518 = vpow2.f32 %v270_v41 }
 0x2a0   : > { %520 = vpow2.f32 %v272_v42 }
 0x2a1   : > { %522 = vpow2.f32 %v259_v46 }
 0x2a5   : > { %v519_v43 = vpop.eup %518 }
 0x2a6   : > { %v521_v44 = vpop.eup %520 }
 0x2a7   : > { %v274_v45 = vadd.f32 %v521_v44, %v519_v43  ;;  %v523_v47 = vpop.eup %522 }
 0x2a8   : > { %v262_v49 = vmul.f32 %v523_v47, %v261_v48 }
 0x2a9   : > { %275 = vadd.xlane.f32.xlu1 %v274_v45 }
 0x31c   : > { %v276_v50 = vpop.xlane.xlu1 %275 }
 0x31d   : > { %v277_v51 = vadd.f32 %v276_v50, %v262_v49 }
 0x31f   : > { %279 = vst.msk [vmem:[#allocation3] sm:$0xff] %vm278_vm4, %v277_v51 }
 0x320 PF: > { %283 = sbr.rel (%p428_p2) target bundleno = 869 (0x365), region = 48 }
 0x325   : > { %v284_v52 = vld [vmem:[%s738_s30] sm:$0xff]  ;;  %vm322_vm8 = vcmask 7168  }
 0x326   : > { %v286_v53 = vmul.f32 %v284_v52, %v284_v52  ;;  %v285_v0 = vmul.f32 32.0, %v284_v52  ;;  %v301_v2 = vmul.f32 0.9800666, %v284_v52  ;;  %v432_v5 = vadd.f32 -0.019933423, %v284_v52  ;;  %v308_v6 = vld [vmem:[#allocation2] sm:$0xff] }
 0x327   : > { %vm304_vm7 = vcmp.gt.f32.partialorder %v284_v52, -0.9800666  ;;  %v309_v14 = vld [vmem:[#allocation3] sm:$0xff] }
 0x328   : > { %v287_v54 = vsub.f32 1.0, %v286_v53  ;;  %v314_v8 = vsub.f32 %v285_v0, %v308_v6 }
 0x32a   : > { %v288_v55 = vmax.f32 %v287_v54, 0.0  ;;  %v315_v11 = vmul.f32 1.442695, %v314_v8 }
 0x32c   : > { %524 = vrsqrt.f32 %v288_v55  ;;  %vm296_vm5 = vcmp.eq.f32.partialorder %v288_v55, inf  ;;  %v299_v62 = vand.u32 2147483648, %v288_v55  ;;  %vm298_vm6 = vcmp.eq.f32.partialorder %v288_v55, 0.0 }
 0x32d   : > { %526 = vpow2.f32 %v315_v11 }
 0x332   : > { %v525_v56 = vpop.eup %524 }
 0x333   : > { %v290_v57 = vmul.f32 %v525_v56, %v288_v55  ;;  %v527_v15 = vpop.eup %526 }
 0x335   : > { %v291_v58 = vmul.f32 %v525_v56, %v290_v57 }
 0x337   : > { %v292_v59 = vmul.f32 0.5, %v291_v58 }
 0x339   : > { %v293_v60 = vsub.f32 1.5, %v292_v59 }
 0x33b   : > { %v294_v61 = vmul.f32 %v525_v56, %v293_v60 }
 0x33d   : > { %v295_v63 = vmul.f32 %v294_v61, %v288_v55 }
 0x33f   : > { %v297_v1 = vsel %vm296_vm5, %v288_v55, %v295_v63 }
 0x340   : > { %v300_v3 = vsel %vm298_vm6, %v299_v62, %v297_v1 }
 0x341   : > { %v302_v4 = vmul.f32 0.19866933, %v300_v3 }
 0x343   : > { %v303_v7 = vsub.f32 %v301_v2, %v302_v4 }
 0x345   : > { %v306_v9 = vsel %vm304_vm7, %v303_v7, %v432_v5 }
 0x346   : > { %v307_v10 = vmul.f32 32.0, %v306_v9 }
 0x348   : > { %v310_v12 = vsub.f32 %v307_v10, %v308_v6 }
 0x34a   : > { %v311_v13 = vmul.f32 1.442695, %v310_v12 }
 0x34c   : > { %528 = vpow2.f32 %v311_v13 }
 0x352   : > { %v529_v16 = vpop.eup %528 }
 0x353   : > { %v313_v17 = vadd.f32 %v529_v16, %v309_v14 }
 0x355   : > { %v317_v18 = vsub.f32 %v313_v17, %v527_v15 }
 0x357   : > { %530 = vlog2.f32 %v317_v18 }
 0x35d   : > { %v531_v19 = vpop.eup %530 }
 0x35e   : > { %v319_v20 = vmul.f32 0.6931472, %v531_v19 }
 0x360   : > { %v320_v21 = vadd.f32 %v319_v20, %v308_v6 }
 0x362   : > { %v321_v22 = vsub.f32 %v320_v21, %v307_v10 }
 0x364   : > { %323 = vst.msk [vmem:[%s743_s5] sm:$0xff] %vm322_vm8, %v321_v22 }
 0x365 PF: > { %s15_s16 = sadd.s32 1, %s628_s16   ;;  %s788_s9 = smov %s604_s10 }
 0x366   : > { %p12_p4 = scmp.ge.s32.totalorder %s15_s16, 10   ;;  %s789_s10 = smov %s608_s11 }
 0x367   : > { %s790_s11 = smov %s716_s29  ;;  %s791_s12 = smov %s620_s14 }
 0x368   : > { %s792_s13 = smov %s624_s15  ;;  %s793_s14 = smov %s796_s18 }
 0x369   : > { %s794_s15 = smov %s800_s19  ;;  %14 = sbr.rel (!%p12_p4) target bundleno = 5 (0x5), region = 87 }
 0x36e   :  { %343 = vsyncpa [#allocation5], 1 }
 0x36f   :  { %345 = vsyncpa [#allocation5 + $0x1], 1 }

</bundles_post_ra>
